<compile_context>
chip_gen: v7x
topology: tpu7x:2x2x1
jax: 0.10.0
libtpu: 0.0.40
codegen_flags: <defaults>
</compile_context>

<pallas_src>
import functools

import jax
import jax.numpy as jnp
from jax.experimental import pallas as pl
from jax.experimental.pallas import tpu as pltpu

_LANE = 128
_SUBLANE = 8


def _round_up(x, m):
    return (x + m - 1) // m * m


def _vmem_budget_bytes():
    # Generation-aware VMEM budget: 128 MiB/TC on v5e/v6e, 64 MiB/TC on v7x.
    try:
        cap = int(pltpu.get_tpu_info().vmem_capacity_bytes)
    except Exception:
        cap = 64 << 20          # conservative default = v7x TensorCore VMEM
    return (cap * 3) // 4       # leave headroom for compiler scratch


def _choose_edge_tile(n_edges, per_col_bytes, resident_bytes, vmem_budget,
                      user_tile):
    """Edge-tile (lane) width: big enough to amortize ~0.35us per-grid-step
    overhead, small enough for the VMEM budget, and leaving >= 2 grid steps
    so v7x's two TensorCores both get work."""
    e128 = _round_up(max(n_edges, 1), _LANE)
    if user_tile is None:
        # ~12 MiB of streaming working set per step, capped at 16K edges.
        tile = min(16384, (12 << 20) // max(per_col_bytes, 1))
    else:
        tile = int(user_tile)
    vmem_cols = (vmem_budget - resident_bytes) // max(per_col_bytes, 1)
    tile = min(tile, max(vmem_cols, _LANE), e128)
    tile = max(_LANE, (tile // _LANE) * _LANE)
    if tile >= e128 and e128 >= 2 * _LANE:          # keep >= 2 grid steps
        tile = max(_LANE, ((e128 // 2) // _LANE) * _LANE)
    return tile


def _compiler_params(vmem_budget):
    return pltpu.CompilerParams(dimension_semantics=("parallel",),
                                vmem_limit_bytes=int(vmem_budget))


def _idx_2d(idx, e_pad):
    pad = e_pad - idx.shape[0]
    return jnp.pad(idx.astype(jnp.int32), (0, pad)).reshape(1, e_pad)


# --------------------------------------------------------------------------
# Kernels
# --------------------------------------------------------------------------
def _edge_mlp_onehot_kernel(src_ref, dst_ref, ht_ref, w_ref, b_ref, o_ref, *,
                            feat):
    """Small-graph path: node features stay resident in VMEM; the per-edge
    endpoint gather is done in-kernel as an exact one-hot selection on the
    MXU (which has massive slack here)."""
    ht = ht_ref[...]                              # [F, N_pad] (compute dtype)
    w = w_ref[...]                                # [C, 2F]
    # Per-node projections; C*2F*N_pad MACs per tile -> negligible.
    pu = jnp.dot(w[:, :feat], ht, preferred_element_type=jnp.float32)
    pv = jnp.dot(w[:, feat:], ht, preferred_element_type=jnp.float32)
    n_pad = ht.shape[1]
    tile = src_ref.shape[1]
    node_id = jax.lax.broadcasted_iota(jnp.int32, (n_pad, tile), 0)
    sel_u = (node_id == src_ref[...]).astype(jnp.float32)   # [N_pad, T]
    sel_v = (node_id == dst_ref[...]).astype(jnp.float32)
    acc = (jnp.dot(pu, sel_u, preferred_element_type=jnp.float32)
           + jnp.dot(pv, sel_v, preferred_element_type=jnp.float32))
    o_ref[...] = acc + b_ref[...]                 # lane-dense [C, T], f32


def _edge_mlp_take_kernel(src_ref, dst_ref, h_ref, w_ref, b_ref, o_ref):
    """Medium-graph path: h resident in VMEM, in-kernel row gather via
    jnp.take (vector dynamic gather).  Mosaic support varies by version, so
    the caller probes this path and falls back to the X-stream kernel."""
    idx_u = src_ref[...][0]                       # [T] int32
    idx_v = dst_ref[...][0]
    h_all = h_ref[...]                            # [N_pad, F] resident
    x = jnp.concatenate([jnp.take(h_all, idx_u, axis=0),
                         jnp.take(h_all, idx_v, axis=0)], axis=1)   # [T, 2F]
    acc = jax.lax.dot_general(w_ref[...], x, (((1,), (1,)), ((), ())),
                              preferred_element_type=jnp.float32)   # [C, T]
    o_ref[...] = acc + b_ref[...]


def _edge_mlp_xmat_kernel(x_ref, w_ref, b_ref, o_ref):
    """General fallback: X = concat(h[src], h[dst]).T is materialized by XLA
    (feature-major, bf16 by default) and streamed through the kernel."""
    acc = jnp.dot(w_ref[...], x_ref[...], preferred_element_type=jnp.float32)
    o_ref[...] = acc + b_ref[...]


# --------------------------------------------------------------------------
# Per-path pallas_call wrappers
# --------------------------------------------------------------------------
def _run_onehot(h, src, dst, w, b2, cd, vmem_budget, user_tile):
    n, f = h.shape
    c = w.shape[0]
    e = src.shape[0]
    n_pad = _round_up(n, _SUBLANE)
    cdb = jnp.dtype(cd).itemsize
    per_col = 2 * 2 * 4 + 2 * c * 4 + 3 * n_pad * 4 + c * 4
    resident = 2 * (f * n_pad + c * 2 * f) * cdb + 2 * c * 4
    tile = _choose_edge_tile(e, per_col, resident, vmem_budget, user_tile)
    e_pad = _round_up(e, tile)
    src2 = _idx_2d(src, e_pad)
    dst2 = _idx_2d(dst, e_pad)
    ht = jnp.pad(h.astype(cd).T, ((0, 0), (0, n_pad - n)))      # [F, N_pad]
    kernel = functools.partial(_edge_mlp_onehot_kernel, feat=f)
    return pl.pallas_call(
        kernel,
        out_shape=jax.ShapeDtypeStruct((c, e_pad), jnp.float32),
        grid_spec=pltpu.PrefetchScalarGridSpec(
            num_scalar_prefetch=0,
            grid=(e_pad // tile,),
            in_specs=[
                pl.BlockSpec((1, tile), lambda i: (0, i)),       # src ids
                pl.BlockSpec((1, tile), lambda i: (0, i)),       # dst ids
                pl.BlockSpec((f, n_pad), lambda i: (0, 0)),      # h.T resident
                pl.BlockSpec((c, 2 * f), lambda i: (0, 0)),      # W resident
                pl.BlockSpec((c, 1), lambda i: (0, 0)),          # bias
            ],
            out_specs=pl.BlockSpec((c, tile), lambda i: (0, i)),
        ),
        compiler_params=_compiler_params(vmem_budget),
    )(src2, dst2, ht, w.astype(cd), b2)


def _run_take(h, src, dst, w, b2, cd, vmem_budget, user_tile):
    n, f = h.shape
    c = w.shape[0]
    e = src.shape[0]
    n_pad = _round_up(n, _SUBLANE)
    cdb = jnp.dtype(cd).itemsize
    per_col = 2 * 2 * 4 + 2 * c * 4 + 4 * f * cdb + c * 4
    resident = 2 * (n_pad * f + c * 2 * f) * cdb + 2 * c * 4
    tile = _choose_edge_tile(e, per_col, resident, vmem_budget, user_tile)
    e_pad = _round_up(e, tile)
    src2 = _idx_2d(src, e_pad)
    dst2 = _idx_2d(dst, e_pad)
    h_pad = jnp.pad(h.astype(cd), ((0, n_pad - n), (0, 0)))     # [N_pad, F]
    return pl.pallas_call(
        _edge_mlp_take_kernel,
        out_shape=jax.ShapeDtypeStruct((c, e_pad), jnp.float32),
        grid_spec=pltpu.PrefetchScalarGridSpec(
            num_scalar_prefetch=0,
            grid=(e_pad // tile,),
            in_specs=[
                pl.BlockSpec((1, tile), lambda i: (0, i)),
                pl.BlockSpec((1, tile), lambda i: (0, i)),
                pl.BlockSpec((n_pad, f), lambda i: (0, 0)),      # h resident
                pl.BlockSpec((c, 2 * f), lambda i: (0, 0)),
                pl.BlockSpec((c, 1), lambda i: (0, 0)),
            ],
            out_specs=pl.BlockSpec((c, tile), lambda i: (0, i)),
        ),
        compiler_params=_compiler_params(vmem_budget),
    )(src2, dst2, h_pad, w.astype(cd), b2)


def _x_block_spec(two_f, tile):
    try:   # triple-buffer the X stream to hide DMA issue latency
        return pl.BlockSpec((two_f, tile), lambda i: (0, i),
                            pipeline_mode=pl.Buffered(3))
    except Exception:      # older jax without pipeline_mode / Buffered
        return pl.BlockSpec((two_f, tile), lambda i: (0, i))


def _run_xmat(h, src, dst, w, b2, cd, vmem_budget, user_tile):
    n, f = h.shape
    c = w.shape[0]
    e = src.shape[0]
    cdb = jnp.dtype(cd).itemsize
    per_col = 3 * 2 * f * cdb + 2 * c * 4
    resident = 2 * (c * 2 * f * cdb + c * 4)
    tile = _choose_edge_tile(e, per_col, resident, vmem_budget, user_tile)
    e_pad = _round_up(e, tile)
    pad = e_pad - e
    src_p = jnp.pad(src.astype(jnp.int32), (0, pad))
    dst_p = jnp.pad(dst.astype(jnp.int32), (0, pad))
    # Cast h to the compute dtype BEFORE the gather so X is produced/stored in
    # bf16 (halves the dominant HBM stream).
    # TODO(synk): when Mosaic vector dynamic-gather is reliable for large N,
    # retire this path and keep h resident in the kernel (see _run_take).
    h_t = h.astype(cd).T                                         # [F, N]
    x = jnp.concatenate([jnp.take(h_t, src_p, axis=1),
                         jnp.take(h_t, dst_p, axis=1)], axis=0)  # [2F, E_pad]
    return pl.pallas_call(
        _edge_mlp_xmat_kernel,
        out_shape=jax.ShapeDtypeStruct((c, e_pad), jnp.float32),
        grid_spec=pltpu.PrefetchScalarGridSpec(
            num_scalar_prefetch=0,
            grid=(e_pad // tile,),
            in_specs=[
                _x_block_spec(2 * f, tile),                      # X stream
                pl.BlockSpec((c, 2 * f), lambda i: (0, 0)),      # W resident
                pl.BlockSpec((c, 1), lambda i: (0, 0)),          # bias
            ],
            out_specs=pl.BlockSpec((c, tile), lambda i: (0, i)),
        ),
        compiler_params=_compiler_params(vmem_budget),
    )(x, w.astype(cd), b2)


# --------------------------------------------------------------------------
# Public forward
# --------------------------------------------------------------------------
def mlp_predictor_forward(h, src, dst, W, b, *, compute_dtype=jnp.bfloat16,
                          edge_tile=None, return_edge_major=True,
                          small_graph_max_nodes=128,
                          resident_h_max_bytes=4 << 20):
    """score[e] = W @ concat(h[src[e]], h[dst[e]]) + b  for every edge.

    Returns float32 [E, C]; with return_edge_major=False returns the
    lane-dense [C, E] layout and skips the final transpose.
    """
    n, f = h.shape
    c, two_f = W.shape
    assert two_f == 2 * f, "W must be [out_classes, 2*in_features]"
    e = src.shape[0]
    assert dst.shape[0] == e

    cd = jnp.dtype(compute_dtype) if compute_dtype is not None else jnp.dtype(jnp.float32)
    b2 = b.astype(jnp.float32).reshape(c, 1)
    vmem_budget = _vmem_budget_bytes()

    out = None
    if n <= small_graph_max_nodes:
        # In-kernel gather against VMEM-resident node features (one-hot / MXU).
        out = _run_onehot(h, src, dst, W, b2, cd, vmem_budget, edge_tile)
    else:
        h_bytes = _round_up(n, _SUBLANE) * f * jnp.dtype(cd).itemsize
        concrete = not hasattr(h, "_trace")    # skip the probe under tracing
        if concrete and h_bytes <= resident_h_max_bytes:
            # Probe the resident-h jnp.take kernel; validate a small sample so
            # an unsupported/mis-lowered gather falls back silently.
            try:
                cand = jax.block_until_ready(
                    _run_take(h, src, dst, W, b2, cd, vmem_budget, edge_tile))
                k = min(e, 64)
                chk = (jnp.concatenate([h[src[:k]], h[dst[:k]]], axis=1)
                       .astype(cd) @ W.astype(cd).T).astype(jnp.float32)
                chk = chk + b.astype(jnp.float32)
                if bool(jnp.allclose(cand[:, :k].T, chk, atol=1e-2, rtol=1e-2)):
                    out = cand
            except Exception:
                out = None
        if out is None:
            out = _run_xmat(h, src, dst, W, b2, cd, vmem_budget, edge_tile)

    if return_edge_major:
        return out[:, :e].T          # [E, C], matches the PyTorch module
    return out[:, :e]                # lane-dense [C, E], no transpose


if __name__ == "__main__":
    key = jax.random.PRNGKey(0)
    ks = jax.random.split(key, 10)

    # ---- Case 1: DGL-tutorial-sized graph -> in-kernel one-hot gather path.
    N, F, C, E = 10, 16, 8, 300
    h = jax.random.normal(ks[0], (N, F), dtype=jnp.float32)
    src = jax.random.randint(ks[1], (E,), 0, N, dtype=jnp.int32)
    dst = jax.random.randint(ks[2], (E,), 0, N, dtype=jnp.int32)
    bound = 1.0 / (2.0 * F) ** 0.5
    W = jax.random.uniform(ks[3], (C, 2 * F), minval=-bound, maxval=bound,
                           dtype=jnp.float32)
    b = jax.random.uniform(ks[4], (C,), minval=-bound, maxval=bound,
                           dtype=jnp.float32)
    ref = jnp.concatenate([h[src], h[dst]], axis=1) @ W.T + b

    out = mlp_predictor_forward(h, src, dst, W, b, compute_dtype=jnp.float32)
    out = jax.block_until_ready(out)
    assert out.shape == (E, C) and out.dtype == jnp.float32
    assert jnp.allclose(out, ref, atol=1e-4, rtol=1e-4)

    out_bf16 = mlp_predictor_forward(h, src, dst, W, b)   # default bf16 streams
    out_bf16 = jax.block_until_ready(out_bf16)
    assert jnp.allclose(out_bf16, ref, atol=5e-2, rtol=5e-2)

    # ---- Case 2: larger graph -> resident-h take path (or X-stream fallback).
    N2, F2, C2, E2 = 500, 32, 8, 2048
    h2 = jax.random.normal(ks[5], (N2, F2), dtype=jnp.float32)
    src2 = jax.random.randint(ks[6], (E2,), 0, N2, dtype=jnp.int32)
    dst2 = jax.random.randint(ks[7], (E2,), 0, N2, dtype=jnp.int32)
    bound2 = 1.0 / (2.0 * F2) ** 0.5
    W2 = jax.random.uniform(ks[8], (C2, 2 * F2), minval=-bound2, maxval=bound2,
                            dtype=jnp.float32)
    b2 = jax.random.uniform(ks[9], (C2,), minval=-bound2, maxval=bound2,
                            dtype=jnp.float32)
    ref2 = jnp.concatenate([h2[src2], h2[dst2]], axis=1) @ W2.T + b2

    out2 = mlp_predictor_forward(h2, src2, dst2, W2, b2,
                                 compute_dtype=jnp.float32)
    out2 = jax.block_until_ready(out2)
    assert out2.shape == (E2, C2)
    assert jnp.allclose(out2, ref2, atol=1e-4, rtol=1e-4)

    print("KERNEL_OK")
</pallas_src>

<mosaic_0001>
module attributes {stable_mosaic.version = 11 : i64} {
  func.func @_edge_mlp_onehot_kernel(%arg0: i32, %arg1: memref<1x128xi32, #tpu.memory_space<vmem>>, %arg2: memref<1x128xi32, #tpu.memory_space<vmem>>, %arg3: memref<16x16xf32, #tpu.memory_space<vmem>>, %arg4: memref<8x32xf32, #tpu.memory_space<vmem>>, %arg5: memref<8x1xf32, #tpu.memory_space<vmem>>, %arg6: memref<8x128xf32, #tpu.memory_space<vmem>>) attributes {dimension_semantics = [#tpu.dimension_semantics<parallel>], iteration_bounds = array<i64: 3>, scalar_prefetch = 0 : i64, scratch_operands = 0 : i64, tpu.core_type = #tpu.core_type<tc>, window_params = [{transform_indices = @transform_0, window_bounds = array<i64: 1, 128>}, {transform_indices = @transform_1, window_bounds = array<i64: 1, 128>}, {pipeline_mode = #tpu.pipeline_mode<synchronous>, transform_indices = @transform_2, window_bounds = array<i64: 16, 16>}, {pipeline_mode = #tpu.pipeline_mode<synchronous>, transform_indices = @transform_3, window_bounds = array<i64: 8, 32>}, {pipeline_mode = #tpu.pipeline_mode<synchronous>, transform_indices = @transform_4, window_bounds = array<i64: 8, 1>}, {transform_indices = @transform_5, window_bounds = array<i64: 8, 128>}]} {
    %c0 = arith.constant 0 : index
    %c0_0 = arith.constant 0 : index
    %0 = vector.load %arg3[%c0, %c0_0] : memref<16x16xf32, #tpu.memory_space<vmem>>, vector<16x16xf32>
    %c0_1 = arith.constant 0 : index
    %c0_2 = arith.constant 0 : index
    %1 = vector.load %arg4[%c0_1, %c0_2] : memref<8x32xf32, #tpu.memory_space<vmem>>, vector<8x32xf32>
    %2 = vector.extract_strided_slice %1 {offsets = [0, 0], sizes = [8, 16], strides = [1, 1]} : vector<8x32xf32> to vector<8x16xf32>
    %cst = arith.constant dense<0.000000e+00> : vector<8x16xf32>
    %3 = tpu.matmul %2, %0, %cst {dimension_numbers = #tpu.dot_dimension_numbers<[1], [0], [0], [1], [0, 0, 1, 1], [], []>} : vector<8x16xf32>, vector<16x16xf32>, vector<8x16xf32> -> vector<8x16xf32>
    %4 = vector.extract_strided_slice %1 {offsets = [0, 16], sizes = [8, 16], strides = [1, 1]} : vector<8x32xf32> to vector<8x16xf32>
    %cst_3 = arith.constant dense<0.000000e+00> : vector<8x16xf32>
    %5 = tpu.matmul %4, %0, %cst_3 {dimension_numbers = #tpu.dot_dimension_numbers<[1], [0], [0], [1], [0, 0, 1, 1], [], []>} : vector<8x16xf32>, vector<16x16xf32>, vector<8x16xf32> -> vector<8x16xf32>
    %6 = tpu.iota {dimensions = array<i32: 0>} : vector<16x128xi32>
    %c0_4 = arith.constant 0 : index
    %c0_5 = arith.constant 0 : index
    %7 = vector.load %arg1[%c0_4, %c0_5] : memref<1x128xi32, #tpu.memory_space<vmem>>, vector<1x128xi32>
    %8 = vector.broadcast %7 : vector<1x128xi32> to vector<16x128xi32>
    %9 = arith.cmpi eq, %6, %8 : vector<16x128xi32>
    %10 = arith.extui %9 : vector<16x128xi1> to vector<16x128xi32>
    %11 = arith.sitofp %10 : vector<16x128xi32> to vector<16x128xf32>
    %c0_6 = arith.constant 0 : index
    %c0_7 = arith.constant 0 : index
    %12 = vector.load %arg2[%c0_6, %c0_7] : memref<1x128xi32, #tpu.memory_space<vmem>>, vector<1x128xi32>
    %13 = vector.broadcast %12 : vector<1x128xi32> to vector<16x128xi32>
    %14 = arith.cmpi eq, %6, %13 : vector<16x128xi32>
    %15 = arith.extui %14 : vector<16x128xi1> to vector<16x128xi32>
    %16 = arith.sitofp %15 : vector<16x128xi32> to vector<16x128xf32>
    %cst_8 = arith.constant dense<0.000000e+00> : vector<8x128xf32>
    %17 = tpu.matmul %3, %11, %cst_8 {dimension_numbers = #tpu.dot_dimension_numbers<[1], [0], [0], [1], [0, 0, 1, 1], [], []>} : vector<8x16xf32>, vector<16x128xf32>, vector<8x128xf32> -> vector<8x128xf32>
    %cst_9 = arith.constant dense<0.000000e+00> : vector<8x128xf32>
    %18 = tpu.matmul %5, %16, %cst_9 {dimension_numbers = #tpu.dot_dimension_numbers<[1], [0], [0], [1], [0, 0, 1, 1], [], []>} : vector<8x16xf32>, vector<16x128xf32>, vector<8x128xf32> -> vector<8x128xf32>
    %19 = arith.addf %17, %18 : vector<8x128xf32>
    %c0_10 = arith.constant 0 : index
    %c0_11 = arith.constant 0 : index
    %20 = vector.load %arg5[%c0_10, %c0_11] : memref<8x1xf32, #tpu.memory_space<vmem>>, vector<8x1xf32>
    %21 = vector.broadcast %20 : vector<8x1xf32> to vector<8x128xf32>
    %22 = arith.addf %19, %21 : vector<8x128xf32>
    %c0_12 = arith.constant 0 : index
    %c0_13 = arith.constant 0 : index
    %23 = vector.load %arg6[%c0_12, %c0_13] : memref<8x128xf32, #tpu.memory_space<vmem>>, vector<8x128xf32>
    tpu.vector_store %arg6[%c0_12, %c0_13], %22 {strides = array<i32>} : memref<8x128xf32, #tpu.memory_space<vmem>>, vector<8x128xf32>,
    return
  }
  func.func @transform_0(%arg0: i32) -> (i32, i32) {
    %c0_i32 = arith.constant 0 : i32
    %c0_i32_0 = arith.constant 0 : i32
    return %c0_i32, %arg0 : i32, i32
  }
  func.func @transform_1(%arg0: i32) -> (i32, i32) {
    %c0_i32 = arith.constant 0 : i32
    %c0_i32_0 = arith.constant 0 : i32
    return %c0_i32, %arg0 : i32, i32
  }
  func.func @transform_2(%arg0: i32) -> (i32, i32) {
    %c0_i32 = arith.constant 0 : i32
    %c0_i32_0 = arith.constant 0 : i32
    %c0_i32_1 = arith.constant 0 : i32
    return %c0_i32, %c0_i32_0 : i32, i32
  }
  func.func @transform_3(%arg0: i32) -> (i32, i32) {
    %c0_i32 = arith.constant 0 : i32
    %c0_i32_0 = arith.constant 0 : i32
    %c0_i32_1 = arith.constant 0 : i32
    return %c0_i32, %c0_i32_0 : i32, i32
  }
  func.func @transform_4(%arg0: i32) -> (i32, i32) {
    %c0_i32 = arith.constant 0 : i32
    %c0_i32_0 = arith.constant 0 : i32
    %c0_i32_1 = arith.constant 0 : i32
    return %c0_i32, %c0_i32_0 : i32, i32
  }
  func.func @transform_5(%arg0: i32) -> (i32, i32) {
    %c0_i32 = arith.constant 0 : i32
    %c0_i32_0 = arith.constant 0 : i32
    return %c0_i32, %arg0 : i32, i32
  }
}

</mosaic_0001>

<bundles_post_ra>
// kernel: tpu_custom_call.1
= control target key start
LH: loop header
LB: loop body
LE: loop exit
PB: predicated region body
PF: predicated region fallthrough
CT: control target
= control target key end

     0   :  { %s1330_s0 = inlined_call_operand.hbm [shape: s32[1,384], index: 0, kind: input, shape index: {}]   ;;  %s1331_s1 = inlined_call_operand.hbm [shape: s32[1,384], index: 1, kind: input, shape index: {}]   ;;  %s1332_s2 = inlined_call_operand.vmem [shape: f32[16,16], index: 2, kind: input, shape index: {}]   ;;  %s1333_s3 = inlined_call_operand.hbm [shape: f32[8,32], index: 3, kind: input, shape index: {}]   ;;  %s1334_s4 = inlined_call_operand.vmem [shape: f32[8,1], index: 4, kind: input, shape index: {}]   ;;  %s1335_s5 = inlined_call_operand.hbm [shape: f32[8,384], index: 5, kind: output, shape index: {}]  }
   0x1   :  { %1340 = sst [smem:[#allocation13_spill]] %s1330_s0 }
   0x2   :  { %1341 = sst [smem:[#allocation14_spill]] %s1333_s3 }
   0x3   :  { %10 = vsyncpa [#allocation3], 0 }
   0x4   :  { %12 = vsyncpa [#allocation3 + $0x1], 0 }
   0x5   :  { %13 = vsyncpa [#allocation6], 0 }
   0x6   :  { %15 = vsyncpa [#allocation6 + $0x1], 0 }
   0x7   :  { %16 = vsyncpa [#allocation4], 0 }
   0x8   :  { %18 = vsyncpa [#allocation4 + $0x1], 0  ;;  %s1075_s18 = smov 0   ;;  %s1077_s19 = smov 0  }
   0x9   :  { %s1079_s20 = smov 0   ;;  %s1081_s21 = smov 0  }
   0xa LB: > { %s1096_s22 = sadd.s32 4294967295, %s1033_s21   ;;  %s723_s23 = sadd.s32 4294967294, %s1033_s21   ;;  %s1033_s21 = sphi %s1081_s21, %s1363_s21   ;;  %s1029_s20 = sphi %s1079_s20, %s1362_s20   ;;  %s1025_s19 = sphi %s1077_s19, %s1361_s19   ;;  %s1021_s18 = sphi %s1075_s18, %s1360_s18  }
   0xb   : > { %s1100_s24 = sadd.s32 1, %s1033_s21   ;;  %s31_s25 = sadd.s32 1, %s1029_s20 }
   0xc   : > { %s28_s26 = ssub.s32 %s1033_s21, %s1100_s24  ;;  %p38_p0 = scmp.ne.s32.totalorder %s1029_s20, %s1025_s19 }
   0xd   : > { %p29_p1 = scmp.eq.s32.totalorder %s28_s26, 0  ;;  %p44_p2 = scmp.ne.s32.totalorder %s1025_s19, %s1021_s18 }
   0xe   : > { %p1336_p3 = scmp.eq.s32.totalorder %s1096_s22, 0  ;;  %p157_p4 = scmp.eq.s32.totalorder %s1096_s22, 2 }
   0xf   : > { %s1112_s27 = scalar_select %p29_p1, %s1029_s20, %s31_s25  }
  0x10   : > { %p1116_p5 = por %p1336_p3, %p44_p2  ;;  %p1123_p6 = por %p157_p4, %p38_p0 }
  0x11   : > { %p163_p7 = scmp.eq.s32.totalorder %s723_s23, 2  ;;  %p724_p8 = scmp.ge.s32.totalorder %s1033_s21, 1 }
  0x12   : > { %s1342_s28 = scalar_select %p1116_p5, 1, 0 }
  0x13   : > { %s1343_s29 = scalar_select %p1123_p6, 1, 0 }
  0x14   : > { %p170_p9 = scmp.lt.s32.totalorder %s1033_s21, 4  ;;  %p1129_p10 = por %p163_p7, %p44_p2 }
  0x15   : > { %s1035_s7 = smov [#allocation7]   ;;  %p39_p13 = scmp.eq.s32.totalorder %s1033_s21, 0 }
  0x16   : > { %s1344_s30 = scalar_select %p1129_p10, 1, 0 }
  0x17   : > { %p1133_p11 = pnand %p724_p8, %p170_p9  ;;  %s186_s8 = sshll.u32 %s1035_s7, 4  ;;  %s187_s8 = int_to_ptr.vmem [resolvable:$true] %s186_s8 }
  0x18   : > { %s1142_s9 = sand.u32 1, %s1029_s20   ;;  %p1153_p2 = por %p39_p13, %p38_p0 }
  0x19   : > { %s1345_s6 = scalar_select %p1133_p11, 1, 0 }
  0x1a   : > { %p812_p12 = pneg %p1133_p11  ;;  %s727_s12 = sshll.u32 %s1033_s21, 4 }
  0x1b   : > { %s1347_s11 = scalar_select %p1153_p2, 1, 0 }
  0x1c   : > { %p1146_p4 = pnand %p812_p12, %p1336_p3  ;;  %s1348_s3 = sld [smem:[#allocation14_spill]] }
  0x1e   : > { %p873_p8 = pneg %p1146_p4 }
  0x22   : > { %s871_s15 = scalar_lea.hbm %s1348_s3, 128 }
  0x23   : > { %p872_p7 = scmp.ne.s32.totalorder %s1348_s3, %s871_s15  ;;  %p878_p0 = scmp.lt.u32.totalorder %s871_s15, %s1348_s3 }
  0x25   : > { %p874_p9 = pnand %p873_p8, %p872_p7 }
  0x27   : > { %p875_p12 = pneg %p874_p9 }
  0x29   : > { %p880_p13 = pnand %p878_p0, %p875_p12 }
  0x2b   : > { %883 = shalt.err (!%p880_p13)
}
  0x2c   : > { %s884_s26 = scalar_lea.vmem %s187_s8, 128  ;;  %p892_p6 = scmp.lt.s32.totalorder %s187_s8, %s187_s8 }
  0x2d   : > { %p885_p3 = scmp.ne.s32.totalorder %s187_s8, %s884_s26  ;;  %p893_p5 = scmp.lt.s32.totalorder %s884_s26, %s884_s26 }
  0x2f   : > { %p887_p1 = pnand %p885_p3, %p873_p8  ;;  %p894_p11 = por %p893_p5, %p892_p6 }
  0x31   : > { %p888_p10 = pneg %p887_p1 }
  0x33   : > { %p895_p2 = pnand %p894_p11, %p888_p10 }
  0x35   : > { %898 = shalt.err (!%p895_p2)
}
  0x36   : > { %815 = dma.hbm_to_vmem [thread:$0]  (!%p1146_p4), %s1348_s3, 128, %s187_s8, [#allocation6]  }
  0x37   : > { %s1349_s0 = sld [smem:[#allocation13_spill]]  ;;  %s203_s17 = scalar_lea.vmem [#allocation2], %s1142_s9 }
  0x38   : > { %s210_s10 = sshll.u32 %s203_s17, 4  ;;  %p1350_p3 = scmp.ne.s32.totalorder %s1347_s11, 0  ;;  %s1180_s10 = int_to_ptr.vmem [resolvable:$true] %s210_s10 }
  0x39   : > { %p1351_p5 = scmp.lt.s32.totalorder %s1033_s21, 3  ;;  %s1194_s7 = scalar_lea.hbm %s1331_s1, %s727_s12 }
  0x3a   : > { %s201_s13 = scalar_lea.sflag [#allocation3], %s1142_s9 }
  0x3b   : > { %p1186_p6 = pnand %p1351_p5, %p1350_p3 }
  0x3d   : > { %s1177_s16 = scalar_lea.hbm %s1349_s0, %s727_s12  ;;  %p901_p11 = pneg %p1186_p6 }
  0x3e   : > { %s899_s14 = scalar_lea.hbm %s1177_s16, 16  ;;  %s904_s17 = scalar_lea.hbm %s1349_s0, 48 }
  0x3f   : > { %p900_p10 = scmp.ne.s32.totalorder %s1177_s16, %s899_s14  ;;  %p905_p2 = scmp.lt.u32.totalorder %s1177_s16, %s1349_s0 }
  0x40   : > { %p906_p7 = scmp.lt.u32.totalorder %s904_s17, %s899_s14  ;;  %p908_p9 = scmp.lt.u32.totalorder %s899_s14, %s1177_s16 }
  0x41   : > { %p902_p1 = pnand %p901_p11, %p900_p10 }
  0x42   : > { %p907_p8 = por %p906_p7, %p905_p2 }
  0x43   : > { %p903_p4 = pneg %p902_p1 }
  0x44   : > { %p909_p12 = por %p908_p9, %p907_p8 }
  0x46   : > { %p910_p0 = pnand %p909_p12, %p903_p4 }
  0x48   : > { %913 = shalt.err (!%p910_p0)
}
  0x49   : > { %s914_s12 = scalar_lea.vmem %s1180_s10, 16  ;;  %s1036_s25 = smov [#allocation2]  }
  0x4a   : > { %p915_p13 = scmp.ne.s32.totalorder %s1180_s10, %s914_s12  ;;  %s919_s26 = sshll.u32 %s1036_s25, 4  ;;  %s920_s26 = int_to_ptr.vmem [resolvable:$false] %s919_s26 }
  0x4b   : > { %s921_s3 = scalar_lea.vmem %s920_s26, 32  ;;  %p922_p10 = scmp.lt.s32.totalorder %s1180_s10, %s920_s26 }
  0x4c   : > { %p917_p3 = pnand %p915_p13, %p901_p11  ;;  %p923_p1 = scmp.lt.s32.totalorder %s921_s3, %s914_s12 }
  0x4e   : > { %p918_p5 = pneg %p917_p3  ;;  %p924_p2 = por %p923_p1, %p922_p10 }
  0x50   : > { %p925_p7 = pnand %p924_p2, %p918_p5 }
  0x52   : > { %928 = shalt.err (!%p925_p7)
}
  0x53   : > { %819 = dma.hbm_to_vmem [thread:$0]  (!%p1186_p6), %s1177_s16, 16, %s1180_s10, %s201_s13  }
  0x54   : > { %s220_s8 = scalar_lea.vmem [#allocation5], %s1142_s9  ;;  %s1353_s11 = sand.u32 1, %s1033_s21  }
  0x55   : > { %s227_s14 = sshll.u32 %s220_s8, 4  ;;  %s218_s15 = scalar_lea.sflag [#allocation6], %s1353_s11  ;;  %s228_s14 = int_to_ptr.vmem [resolvable:$true] %s227_s14 }
  0x56   : > { %s929_s17 = scalar_lea.hbm %s1194_s7, 16  ;;  %s934_s26 = scalar_lea.hbm %s1331_s1, 48 }
  0x57   : > { %p930_p4 = scmp.ne.s32.totalorder %s1194_s7, %s929_s17  ;;  %p935_p12 = scmp.lt.u32.totalorder %s1194_s7, %s1331_s1 }
  0x58   : > { %p936_p0 = scmp.lt.u32.totalorder %s934_s26, %s929_s17  ;;  %p938_p3 = scmp.lt.u32.totalorder %s929_s17, %s1194_s7 }
  0x59   : > { %p932_p8 = pnand %p930_p4, %p901_p11 }
  0x5a   : > { %p937_p13 = por %p936_p0, %p935_p12 }
  0x5b   : > { %p933_p9 = pneg %p932_p8 }
  0x5c   : > { %p939_p5 = por %p938_p3, %p937_p13 }
  0x5e   : > { %p940_p10 = pnand %p939_p5, %p933_p9 }
  0x60   : > { %943 = shalt.err (!%p940_p10)
}
  0x61   : > { %s944_s9 = scalar_lea.vmem %s228_s14, 16  ;;  %s1037_s16 = smov [#allocation5]  }
  0x62   : > { %p945_p1 = scmp.ne.s32.totalorder %s228_s14, %s944_s9  ;;  %s949_s10 = sshll.u32 %s1037_s16, 4  ;;  %s950_s10 = int_to_ptr.vmem [resolvable:$false] %s949_s10 }
  0x63   : > { %s951_s13 = scalar_lea.vmem %s950_s10, 32  ;;  %p952_p4 = scmp.lt.s32.totalorder %s228_s14, %s950_s10 }
  0x64   : > { %p947_p2 = pnand %p945_p1, %p901_p11  ;;  %p953_p8 = scmp.lt.s32.totalorder %s951_s13, %s944_s9 }
  0x66   : > { %p948_p7 = pneg %p947_p2  ;;  %p954_p0 = por %p953_p8, %p952_p4 }
  0x68   : > { %p955_p12 = pnand %p954_p0, %p948_p7 }
  0x6a   : > { %958 = shalt.err (!%p955_p12)
}
  0x6b   : > { %822 = dma.hbm_to_vmem [thread:$0]  (!%p1186_p6), %s1194_s7, 16, %s228_s14, %s218_s15  }
  0x6c   : > { %p1354_p9 = scmp.ne.s32.totalorder %s1345_s6, 0 }
  0x6d   : > { %s1247_s0 = sand.u32 (!%p1354_p9), 1, %s1025_s19   ;;  %p1355_p11 = scmp.ne.s32.totalorder (!%p1354_p9), %s1342_s28, 0 }
  0x6e   : > { %236 = sbr.rel (%p1354_p9) target bundleno = 684 (0x2ac), region = 40  ;;  %s239_s8 = scalar_lea.sflag (!%p1354_p9), [#allocation3], %s1247_s0 }
  0x6f   : > { %s241_s11 = scalar_lea.vmem (!%p1354_p9), [#allocation2], %s1247_s0 }
  0x75   : > { %1004 = dma.done.wait (%p1355_p11), %s239_s8, 16  }
  0x76   : > { %1006 = vsyncadd (%p1355_p11), %s239_s8, 4294967280  ;;  %s246_s23 = sand.u32 1, %s1096_s22   ;;  %s249_s6 = scalar_lea.vmem [#allocation5], %s1247_s0 }
  0x77   : > { %s247_s7 = scalar_lea.sflag [#allocation6], %s246_s23 }
  0x78   : > { %1008 = dma.done.wait (%p1355_p11), %s247_s7, 16  }
  0x79   : > { %1010 = vsyncadd (%p1355_p11), %s247_s7, 4294967280  ;;  %p1356_p6 = scmp.eq.s32.totalorder %s1096_s22, 0 }
  0x7b   : > { %1012 = dma.done.wait (%p1356_p6), [#allocation6], 128   ;;  %p1357_p13 = pmov %p1356_p6 }
  0x7c   : > { %v434_v0 = vlaneseq  ;;  %v1038_v1 = vmov 0.0|0.0   ;;  %vm1039_vm0 = vmmov 0   ;;  %v1040_v2 = vmov 0.0   ;;  %v285_v5 = vld [vmem:[#allocation7] sm:$0xff]  ;;  %s1041_s12 = smov 112   ;;  %s731_s3 = sshll.u32 %s1247_s0, 3 }
  0x7d   : > { %1014 = vsyncadd (%p1357_p13), [#allocation6], 4294967168  ;;  %790 = vmatprep.subr.bf16.mxu0 %v1038_v1  ;;  %793 = vmatprep.subr.bf16.mxu1 %v1038_v1  ;;  %v283_v6 = vld [vmem:[%s1332_s2] sm:$0xff]  ;;  %v284_v7 = vld [vmem:[%s1332_s2 + $0x8] sm:$0xff]  ;;  %vm286_vm5 = vcmask 130048   ;;  %v1043_v14 = vmov 0  }
  0x7e   : > { %766 = vmatprep.mubr.msk.f32.mxu0 %vm1039_vm0, %v1040_v2  ;;  %773 = vmatprep.mubr.msk.f32.mxu1 %vm1039_vm0, %v1040_v2  ;;  %v435_v3 = vshrl.u32 %v434_v0, 7  ;;  %v791_v8 = vpack.c.bf16 %v284_v7, %v283_v6  ;;  %v737_v9 = vld [vmem:[%s249_s6] ss:$0 sm:$0xff]  ;;  %v1042_v11 = vmov 1.0|1.0   ;;  %s747_s9 = sshll.u32 %s1096_s22, 7 }
  0x7f   : > { %360 = vrot.lane.b32.xlu0 %v285_v5, %s1041_s12  ;;  %v734_v10 = vld [vmem:[%s241_s11] ss:$0 sm:$0xff]  ;;  %s282_s16 = scalar_lea.vmem [#allocation8], %s731_s3  ;;  %s1287_s11 = scalar_lea.hbm %s1335_s5, %s747_s9 }
  0x80   : > { %v436_v4 = vadd.s32 8, %v435_v3  ;;  %vm453_vm1 = vcmp.eq.s32.totalorder %v435_v3, %v737_v9  ;;  %vm442_vm3 = vcmp.eq.s32.totalorder %v435_v3, %v734_v10  ;;  %792 = vmatpush3.bf16.msra.mxu0 %v791_v8  ;;  %795 = vmatpush3.bf16.msra.mxu1 %v791_v8  ;;  %v605_v13 = vld [vmem:[%s1334_s4] sm:$0xff]  ;;  %s627_s10 = sshll.u32 %s282_s16, 4  ;;  %s614_s23 = scalar_lea.sflag [#allocation4], %s1247_s0  ;;  %s1289_s10 = int_to_ptr.vmem [resolvable:$true] %s627_s10 }
  0x81   : > { %796 = vmatprep.subr.bf16.mxu0 %v1038_v1  ;;  %799 = vmatprep.subr.bf16.mxu1 %v1038_v1  ;;  %s959_s7 = scalar_lea.vmem %s1289_s10, 128  ;;  %p1358_p5 = scmp.ne.s32.totalorder %s1343_s29, 0 }
  0x82   : > { %vm454_vm2 = vcmp.eq.s32.totalorder %v436_v4, %v737_v9  ;;  %vm443_vm4 = vcmp.eq.s32.totalorder %v436_v4, %v734_v10  ;;  %870 = vset.pattern.permute.xlu0 %v1043_v14  ;;  %p960_p3 = scmp.ne.s32.totalorder %s1289_s10, %s959_s7  ;;  %s1044_s22 = smov [#allocation8]  }
  0x83   : > { %vm797_vm6 = vmpackc.low %vm454_vm2, %vm453_vm1  ;;  %767 = vmatmul.mubr.msk.f32.vlgmr.msra.gmra.mrb[0].mxu0 %vm286_vm5, %v285_v5  ;;  %608 = vperm.xlu0 %870, %v605_v13   ;;  %s963_s6 = sshll.u32 %s1044_s22, 4  ;;  %s964_s6 = int_to_ptr.vmem [resolvable:$false] %s963_s6 }
  0x84   : > { %vm800_vm7 = vmpackc.low %vm443_vm4, %vm442_vm3  ;;  %798 = vmatpush3.bf16.msk.msra.mxu0 %vm797_vm6, %v1042_v11  ;;  %780 = vmatprep.mubr.msk.f32.mxu0 %vm1039_vm0, %v1040_v2  ;;  %p961_p10 = pnand %p960_p3, %p1358_p5  ;;  %s965_s28 = scalar_lea.vmem %s964_s6, 256 }
  0x85   : > { %p966_p2 = scmp.lt.s32.totalorder %s1289_s10, %s964_s6  ;;  %p967_p7 = scmp.lt.s32.totalorder %s965_s28, %s959_s7 }
  0x86   : > { %p962_p1 = pneg %p961_p10 }
  0x87   : > { %p968_p4 = por %p967_p7, %p966_p2 }
  0x89   : > { %p969_p8 = pnand %p968_p4, %p962_p1 }
  0xf1   : > { %v361_v12 = vpop.permute.xlu0 %360 }
  0xf2   : > { %774 = vmatmul.mubr.msk.f32.vlgmr.msra.gmra.mrb[0].mxu1 %vm286_vm5, %v361_v12 }
  0xf3   : > { %801 = vmatpush3.bf16.msk.msra.mxu1 %vm800_vm7, %v1042_v11  ;;  %787 = vmatprep.mubr.msk.f32.mxu1 %vm1039_vm0, %v1040_v2 }
 0x102   : > { %v609_v22 = vpop.permute.xlu0 %608 }
 0x156   : > { %v356_v15 = vpop.f32.mrb[0].mxu0 }
 0x157   : > { %v768_v16 = vpop.f32.mrb[1].mxu0  ;;  %788 = vmatmul.mubr.msk.f32.vlgmr.msra.gmra.mrb[2].mxu1 %vm286_vm5, %v356_v15 }
 0x1c5   : > { %v430_v17 = vpop.f32.mrb[0].mxu1 }
 0x1c6   : > { %v775_v18 = vpop.f32.mrb[1].mxu1  ;;  %781 = vmatmul.mubr.msk.f32.vlgmr.msra.gmra.mrb[2].mxu0 %vm286_vm5, %v430_v17 }
 0x22a   : > { %v601_v19 = vpop.f32.mrb[2].mxu1 }
 0x22b   : > { %v789_v20 = vpop.f32.mrb[3].mxu1 }
 0x299   : > { %v528_v21 = vpop.f32.mrb[2].mxu0 }
 0x29a   : > { %v602_v23 = vadd.f32 %v601_v19, %v528_v21  ;;  %v782_v24 = vpop.f32.mrb[3].mxu0 }
 0x29c   : > { %v611_v25 = vadd.f32 %v609_v22, %v602_v23 }
 0x29e   : > { %612 = vst [vmem:[%s282_s16] sm:$0xff] %v611_v25 }
 0x29f   : > { %972 = shalt.err (!%p969_p8)
}
 0x2a0   : > { %s973_s0 = scalar_lea.hbm %s1287_s11, 128  ;;  %s977_s17 = scalar_lea.hbm %s1335_s5, 384 }
 0x2a1   : > { %p974_p0 = scmp.ne.s32.totalorder %s1287_s11, %s973_s0  ;;  %p978_p11 = scmp.lt.u32.totalorder %s1287_s11, %s1335_s5 }
 0x2a2   : > { %p979_p6 = scmp.lt.u32.totalorder %s977_s17, %s973_s0  ;;  %p981_p3 = scmp.lt.u32.totalorder %s973_s0, %s1287_s11 }
 0x2a3   : > { %p975_p12 = pnand %p974_p0, %p1358_p5 }
 0x2a4   : > { %p980_p13 = por %p979_p6, %p978_p11 }
 0x2a5   : > { %p976_p9 = pneg %p975_p12 }
 0x2a6   : > { %p982_p10 = por %p981_p3, %p980_p13 }
 0x2a8   : > { %p983_p1 = pnand %p982_p10, %p976_p9 }
 0x2aa   : > { %986 = shalt.err (!%p983_p1)
}
 0x2ab   : > { %810 = dma.vmem_to_hbm [thread:$0]  (%p1358_p5), %s1289_s10, 128, %s1287_s11, %s614_s23  }
 0x2ac PF: > { %p830_p2 = scmp.ge.s32.totalorder %s1033_s21, 2  ;;  %s639_s26 = sand.u32 1, %s1021_s18  }
 0x2ad   : > { %p1359_p7 = scmp.ne.s32.totalorder %s1344_s30, 0  ;;  %s640_s3 = scalar_lea.sflag [#allocation4], %s639_s26 }
 0x2af   : > { %p824_p4 = pnand %p830_p2, %p1359_p7 }
 0x2b1   : > { %1016 = dma.done.wait (!%p824_p4), %s640_s3, 128  }
 0x2b2   : > { %1018 = vsyncadd (!%p824_p4), %s640_s3, 4294967168  ;;  %p21_p8 = scmp.ge.s32.totalorder %s1100_s24, 5   ;;  %s1360_s18 = smov %s1025_s19 }
 0x2b3   : > { %s1361_s19 = smov %s1029_s20  ;;  %s1362_s20 = smov %s1112_s27 }
 0x2b4   : > { %s1363_s21 = smov %s1100_s24  ;;  %23 = sbr.rel (!%p21_p8) target bundleno = 10 (0xa), region = 102 }
 0x2bb   :  { %645 = vsyncpa [#allocation3], 1 }
 0x2bc   :  { %647 = vsyncpa [#allocation3 + $0x1], 1 }
 0x2bd   :  { %648 = vsyncpa [#allocation6], 1 }
 0x2be   :  { %650 = vsyncpa [#allocation6 + $0x1], 1 }
 0x2bf   :  { %651 = vsyncpa [#allocation4], 1 }
 0x2c0   :  { %653 = vsyncpa [#allocation4 + $0x1], 1 }

</bundles_post_ra>
